<compile_context>
chip_gen: v5e
topology: v5e:2x2
jax: 0.10.0
libtpu: 0.0.40
codegen_flags: <defaults>
</compile_context>

<pallas_src>
import functools

import jax
import jax.numpy as jnp
from jax.experimental import pallas as pl
from jax.experimental.pallas import tpu as pltpu

_EPS = 1e-5
_W_RESIDENT_BYTES = 4 * 1024 * 1024   # keep weights VMEM-resident below this


def _round_up(x, m):
    return (x + m - 1) // m * m


@functools.lru_cache(maxsize=1)
def _device_cfg():
    try:
        kind = jax.devices()[0].device_kind.lower()
    except Exception:  # pragma: no cover - defensive
        kind = ""
    if "v5" in kind or "v6" in kind:
        # 128 MiB physical VMEM: bigger tiles + bigger scoped budget push the
        # memory-bound phases toward the HBM roofline.
        return {"tile_p": 512, "tile_n": 512,
                "vmem": 64 * 1024 * 1024, "two_core": False}
    # v7x (64 MiB VMEM, 2 TensorCores) and unknown targets: conservative.
    return {"tile_p": 256, "tile_n": 256,
            "vmem": 32 * 1024 * 1024,
            "two_core": ("v7" in kind) or ("7x" in kind)}


def _largest_tile_n(cn, cap):
    """Largest multiple of 128 that divides cn and is <= cap (cn % 128 == 0)."""
    t = max(128, (min(cap, cn) // 128) * 128)
    while t > 128 and cn % t != 0:
        t -= 128
    return t


def _choose_tiles(P, Kp, Cn, cfg, out_bytes):
    tile_p = min(cfg["tile_p"], _round_up(P, 8))
    # Keep the whole (padded) weight resident when small: with gn == 1 its
    # block index never changes, so it is DMA'd exactly once.
    if 2 * Kp * Cn * 2 <= _W_RESIDENT_BYTES:
        tile_n = Cn
    else:
        tile_n = _largest_tile_n(Cn, cfg["tile_n"])

    def vmem_est(tp, tn):
        # double-buffered patch / weight / output (+ small stats) blocks
        return 2 * (tp * Kp * 2 + Kp * tn * 2 + tp * tn * out_bytes + 8 * tn * 4)

    budget = (cfg["vmem"] * 3) // 4
    while vmem_est(tile_p, tile_n) > budget and tile_p > 8:
        tile_p = max(8, ((tile_p // 2 + 7) // 8) * 8)
    while vmem_est(tile_p, tile_n) > budget and tile_n > 128:
        tile_n = _largest_tile_n(Cn, tile_n // 2)

    Pp = _round_up(P, tile_p)
    gp, gn = Pp // tile_p, Cn // tile_n

    # v7x has two TensorCores: make sure at least one "parallel" grid axis has
    # >= 2 steps so the second core is not idle.
    if cfg["two_core"] and gp == 1 and gn == 1 and Cn >= 256:
        tile_n = _largest_tile_n(Cn, Cn // 2)
        gn = Cn // tile_n
    return tile_p, tile_n, Pp, gp, gn


# ----------------------------- Pallas kernels ------------------------------

def _gemm_bn_relu_fused_kernel(p_ref, w_ref, g_ref, b_ref, o_ref, *, n_rows):
    """One GEMM column tile + full training-mode BatchNorm + ReLU (gp == 1)."""
    y = jnp.dot(p_ref[...], w_ref[...], preferred_element_type=jnp.float32)
    inv_n = 1.0 / n_rows
    mean = jnp.sum(y, axis=0, keepdims=True) * inv_n            # (1, TN)
    # Masked, mean-subtracted variance (padded rows of the patch matrix are
    # zero and must not contribute to E[(y-mean)^2]).
    row = jax.lax.broadcasted_iota(jnp.int32, (y.shape[0], 1), 0)
    centered = jnp.where(row < n_rows, y - mean, 0.0)
    var = jnp.sum(centered * centered, axis=0, keepdims=True) * inv_n
    scale = g_ref[...] * jax.lax.rsqrt(var + _EPS)
    shift = b_ref[...] - mean * scale
    o_ref[...] = jnp.maximum(y * scale + shift, 0.0).astype(o_ref.dtype)


def _gemm_stats_kernel(p_ref, w_ref, y_ref, s_ref):
    """GEMM tile (bf16 output) + per-tile per-channel sum / sum-of-squares."""
    y = jnp.dot(p_ref[...], w_ref[...], preferred_element_type=jnp.float32)
    y_ref[...] = y.astype(y_ref.dtype)
    s = jnp.sum(y, axis=0, keepdims=True)                       # (1, TN)
    ss = jnp.sum(y * y, axis=0, keepdims=True)                  # (1, TN)
    row = jax.lax.broadcasted_iota(jnp.int32, (8, 1), 0)
    s_ref[...] = jnp.where(row == 0, s, jnp.where(row == 1, ss, 0.0))


def _gemm_bias_kernel(p_ref, w_ref, b_ref, o_ref):
    """Plain GEMM + bias (decoder's final ConvTranspose: no BN / ReLU)."""
    o_ref[...] = (
        jnp.dot(p_ref[...], w_ref[...], preferred_element_type=jnp.float32)
        + b_ref[...]).astype(o_ref.dtype)


# ------------------------- gridded GEMM wrappers ----------------------------

def _gemm_stats(patches3, wmat3, cfg):
    """[nph, P, K] @ [nph, K, Cout] -> (y [nph,Pp,Cn] bf16, mean, var)."""
    nph, P, K = patches3.shape
    Cout = wmat3.shape[2]
    Kp, Cn = _round_up(K, 128), _round_up(Cout, 128)
    tile_p, tile_n, Pp, gp, gn = _choose_tiles(P, Kp, Cn, cfg, out_bytes=2)

    p_pad = jnp.pad(patches3, ((0, 0), (0, Pp - P), (0, Kp - K)))
    w_pad = jnp.pad(wmat3, ((0, 0), (0, Kp - K), (0, Cn - Cout))).astype(jnp.bfloat16)

    y, stats = pl.pallas_call(
        _gemm_stats_kernel,
        out_shape=(jax.ShapeDtypeStruct((nph, Pp, Cn), jnp.bfloat16),
                   jax.ShapeDtypeStruct((nph, gp * 8, Cn), jnp.float32)),
        grid_spec=pltpu.PrefetchScalarGridSpec(
            num_scalar_prefetch=0,
            grid=(nph, gp, gn),
            in_specs=[pl.BlockSpec((None, tile_p, Kp), lambda ph, i, j: (ph, i, 0)),
                      pl.BlockSpec((None, Kp, tile_n), lambda ph, i, j: (ph, 0, j))],
            out_specs=[pl.BlockSpec((None, tile_p, tile_n), lambda ph, i, j: (ph, i, j)),
                       pl.BlockSpec((None, 8, tile_n), lambda ph, i, j: (ph, i, j))]),
        compiler_params=pltpu.CompilerParams(
            dimension_semantics=("parallel", "parallel", "parallel"),
            vmem_limit_bytes=cfg["vmem"]),
        cost_estimate=pl.CostEstimate(
            flops=2 * nph * Pp * Kp * Cn, transcendentals=0,
            bytes_accessed=nph * ((Pp * Kp + Kp * Cn) * 2 + Pp * Cn * 2
                                  + gp * 8 * Cn * 4)),
    )(p_pad, w_pad)

    stats = stats.reshape(nph, gp, 8, Cn)
    count = float(nph * P)
    mean = jnp.sum(stats[:, :, 0, :], axis=(0, 1)) / count
    # TODO(synk): E[x^2]-E[x]^2 in f32 can cancel when |mean| >> std; a Welford
    #             accumulation in the stats path would be more robust.
    var = jnp.maximum(
        jnp.sum(stats[:, :, 1, :], axis=(0, 1)) / count - mean * mean, 0.0)
    return y, mean, var


def _gemm_bn_relu(patches, wmat, gamma, beta, out_dtype):
    """[P, K] @ [K, Cout] -> BatchNorm(batch stats) -> ReLU -> [P, Cout]."""
    P, K = patches.shape
    Cout = wmat.shape[1]
    Kp, Cn = _round_up(K, 128), _round_up(Cout, 128)
    cfg = _device_cfg()
    out_b = jnp.dtype(out_dtype).itemsize
    tile_p, tile_n, Pp, gp, gn = _choose_tiles(P, Kp, Cn, cfg, out_b)

    if gp == 1:
        # All rows fit one tile: GEMM + BN + ReLU fully fused in one kernel
        # (no y intermediate, no stats round-trip).
        p_pad = jnp.pad(patches, ((0, Pp - P), (0, Kp - K)))
        w_pad = jnp.pad(wmat, ((0, Kp - K), (0, Cn - Cout))).astype(jnp.bfloat16)
        g_pad = jnp.pad(gamma, (0, Cn - Cout)).astype(jnp.float32).reshape(1, Cn)
        b_pad = jnp.pad(beta, (0, Cn - Cout)).astype(jnp.float32).reshape(1, Cn)
        out = pl.pallas_call(
            functools.partial(_gemm_bn_relu_fused_kernel, n_rows=P),
            out_shape=jax.ShapeDtypeStruct((Pp, Cn), out_dtype),
            grid_spec=pltpu.PrefetchScalarGridSpec(
                num_scalar_prefetch=0,
                grid=(gn,),
                in_specs=[pl.BlockSpec((Pp, Kp), lambda j: (0, 0)),
                          pl.BlockSpec((Kp, tile_n), lambda j: (0, j)),
                          pl.BlockSpec((1, tile_n), lambda j: (0, j)),
                          pl.BlockSpec((1, tile_n), lambda j: (0, j))],
                out_specs=pl.BlockSpec((Pp, tile_n), lambda j: (0, j))),
            compiler_params=pltpu.CompilerParams(
                dimension_semantics=("parallel",),
                vmem_limit_bytes=cfg["vmem"]),
            cost_estimate=pl.CostEstimate(
                flops=2 * Pp * Kp * Cn + 6 * Pp * Cn, transcendentals=Cn,
                bytes_accessed=(Pp * Kp + Kp * Cn) * 2 + Pp * Cn * out_b),
        )(p_pad, w_pad, g_pad, b_pad)
        return out[:P, :Cout]

    # Large-P fallback: GEMM + per-tile stats in Pallas; the per-channel affine
    # + ReLU is applied in XLA where it fuses with the adjacent layout work,
    # instead of a dedicated elementwise kernel round-trip over y.
    y, mean, var = _gemm_stats(patches[None], wmat[None], cfg)
    inv = jax.lax.rsqrt(var[:Cout] + _EPS)
    scale = gamma * inv
    shift = beta - mean[:Cout] * scale
    y = y[0, :P, :Cout].astype(jnp.float32)
    return jnp.maximum(y * scale + shift, 0.0).astype(out_dtype)


def _gemm_bias(patches3, wmat3, bias):
    """[nph, P, K] @ [nph, K, Cout] + bias -> [nph, Pp, Cn] f32."""
    cfg = _device_cfg()
    nph, P, K = patches3.shape
    Cout = wmat3.shape[2]
    Kp, Cn = _round_up(K, 128), _round_up(Cout, 128)
    tile_p, tile_n, Pp, gp, gn = _choose_tiles(P, Kp, Cn, cfg, out_bytes=4)

    p_pad = jnp.pad(patches3, ((0, 0), (0, Pp - P), (0, Kp - K)))
    w_pad = jnp.pad(wmat3, ((0, 0), (0, Kp - K), (0, Cn - Cout))).astype(jnp.bfloat16)
    b_pad = jnp.pad(bias, (0, Cn - Cout)).astype(jnp.float32).reshape(1, Cn)

    return pl.pallas_call(
        _gemm_bias_kernel,
        out_shape=jax.ShapeDtypeStruct((nph, Pp, Cn), jnp.float32),
        grid_spec=pltpu.PrefetchScalarGridSpec(
            num_scalar_prefetch=0,
            grid=(nph, gp, gn),
            in_specs=[pl.BlockSpec((None, tile_p, Kp), lambda ph, i, j: (ph, i, 0)),
                      pl.BlockSpec((None, Kp, tile_n), lambda ph, i, j: (ph, 0, j)),
                      pl.BlockSpec((1, tile_n), lambda ph, i, j: (0, j))],
            out_specs=pl.BlockSpec((None, tile_p, tile_n), lambda ph, i, j: (ph, i, j))),
        compiler_params=pltpu.CompilerParams(
            dimension_semantics=("parallel", "parallel", "parallel"),
            vmem_limit_bytes=cfg["vmem"]),
        cost_estimate=pl.CostEstimate(
            flops=2 * nph * Pp * Kp * Cn, transcendentals=0,
            bytes_accessed=nph * ((Pp * Kp + Kp * Cn) * 2 + Pp * Cn * 4)),
    )(p_pad, w_pad, b_pad)


# ------------------------------ conv plumbing (NHWC) ------------------------

def _im2col_nhwc(x, kh, kw, stride, pad):
    """x [N,H,W,C] (bf16) -> patches [N*Hout*Wout, kh*kw*C] (C fast axis)."""
    N, H, W, C = x.shape
    xp = jnp.pad(x, ((0, 0), (pad, pad), (pad, pad), (0, 0)))
    Hout = (H + 2 * pad - kh) // stride + 1
    Wout = (W + 2 * pad - kw) // stride + 1
    cols = [xp[:, i:i + stride * Hout:stride, j:j + stride * Wout:stride, :]
            for i in range(kh) for j in range(kw)]
    col = jnp.concatenate(cols, axis=-1)          # [N, Hout, Wout, kh*kw*C]
    return col.reshape(N * Hout * Wout, kh * kw * C), Hout, Wout


def _weight_to_gemm(w):
    """PyTorch conv weight [Cout,Cin,kh,kw] -> GEMM matrix [kh*kw*Cin, Cout]."""
    Cout, Cin, kh, kw = w.shape
    return jnp.transpose(w, (2, 3, 1, 0)).reshape(kh * kw * Cin, Cout)


def conv2d_bn_relu_nhwc(x, w, gamma, beta, stride, pad, out_dtype=jnp.bfloat16):
    """Conv2d (bias dropped: cancelled by training-mode BN) + BN + ReLU, NHWC."""
    N = x.shape[0]
    Cout, _, kh, kw = w.shape
    patches, Hout, Wout = _im2col_nhwc(x.astype(jnp.bfloat16), kh, kw, stride, pad)
    out = _gemm_bn_relu(patches, _weight_to_gemm(w), gamma, beta, out_dtype)
    return out.reshape(N, Hout, Wout, Cout)


def _ct_subpixel(x, w_ct):
    """ConvTranspose2d(k=4, s=2, p=1) as a 4-phase subpixel decomposition.

    Output pixel (2h+a, 2w+b) is a stride-1 2x2 conv of x with a 2x2 sub-kernel
    of the transposed-conv weight -> 4 small GEMMs instead of a zero-dilated
    conv (~4x fewer MXU FLOPs, ~4x smaller patch matrices).

    x: [N,H,W,Cin]; w_ct: [Cin,Cout,4,4] (PyTorch layout).
    Returns patches [4, N*H*W, 4*Cin] bf16 and weights [4, 4*Cin, Cout] f32,
    phase order (a, b) = (0,0), (0,1), (1,0), (1,1).
    """
    N, H, W, Cin = x.shape
    Cout = w_ct.shape[1]
    xp = jnp.pad(x.astype(jnp.bfloat16), ((0, 0), (1, 1), (1, 1), (0, 0)))
    patches, weights = [], []
    for a in (0, 1):
        for b in (0, 1):
            taps = [xp[:, a + ty:a + ty + H, b + tx:b + tx + W, :]
                    for ty in (0, 1) for tx in (0, 1)]
            patches.append(
                jnp.concatenate(taps, axis=-1).reshape(N * H * W, 4 * Cin))
            # tap (ty, tx) of output phase (a, b) multiplies
            # w_ct[:, :, 3 - a - 2*ty, 3 - b - 2*tx].
            wsub = jnp.stack([w_ct[:, :, 3 - a - 2 * ty, 3 - b - 2 * tx]
                              for ty in (0, 1) for tx in (0, 1)], axis=0)
            weights.append(wsub.reshape(4 * Cin, Cout))
    return jnp.stack(patches, axis=0), jnp.stack(weights, axis=0)


def _interleave_phases(y4, N, H, W, Cout):
    """[4, N, H, W, C] (phase = a*2+b) -> [N, 2H, 2W, C]."""
    out = y4.reshape(2, 2, N, H, W, Cout).transpose(2, 3, 0, 4, 1, 5)
    return out.reshape(N, 2 * H, 2 * W, Cout)


def conv_transpose_bn_relu_nhwc(x, w_ct, gamma, beta, out_dtype=jnp.bfloat16):
    """ConvTranspose2d(4, s=2, p=1, bias=False) + BN(batch stats) + ReLU."""
    N, H, W, _ = x.shape
    Cout = w_ct.shape[1]
    cfg = _device_cfg()
    patches4, wmat4 = _ct_subpixel(x, w_ct)
    y4, mean, var = _gemm_stats(patches4, wmat4, cfg)   # stats span all phases
    inv = jax.lax.rsqrt(var[:Cout] + _EPS)
    scale = gamma * inv
    shift = beta - mean[:Cout] * scale
    P = N * H * W
    y4 = y4[:, :P, :Cout].reshape(4, N, H, W, Cout).astype(jnp.float32)
    # BN affine + ReLU fuse (in XLA) with the subpixel interleave below, so no
    # dedicated elementwise kernel / extra HBM round-trip is needed.
    y4 = jnp.maximum(y4 * scale + shift, 0.0)
    return _interleave_phases(y4, N, H, W, Cout).astype(out_dtype)


def conv_transpose_bias_nhwc(x, w_ct, bias):
    """ConvTranspose2d(4, s=2, p=1) with bias, no BN / ReLU (decoder output)."""
    N, H, W, _ = x.shape
    Cout = w_ct.shape[1]
    patches4, wmat4 = _ct_subpixel(x, w_ct)
    y4 = _gemm_bias(patches4, wmat4, bias)
    P = N * H * W
    y4 = y4[:, :P, :Cout].reshape(4, N, H, W, Cout)
    return _interleave_phases(y4, N, H, W, Cout)       # f32


# ------------------------------ parameter init -----------------------------
# Note: conv biases that precede a training-mode BatchNorm are exactly
# cancelled by the mean subtraction, so they are omitted from the params.

def _init_conv_weight(key, cout, cin, kh, kw):
    return jax.random.normal(key, (cout, cin, kh, kw), jnp.float32) * 0.05


def init_encoder_params(key, in_channels, ndf=64, n_layers=3):
    keys = jax.random.split(key, n_layers + 2)
    blocks = []
    w = _init_conv_weight(keys[0], ndf, in_channels, 4, 4)
    blocks.append((w, jnp.ones((ndf,), jnp.float32), jnp.zeros((ndf,), jnp.float32)))
    nf_mult = 1
    for n in range(1, n_layers):
        nf_prev = nf_mult
        nf_mult = min(2 ** n, 8)
        w = _init_conv_weight(keys[n], ndf * nf_mult, ndf * nf_prev, 4, 4)
        blocks.append((w,
                       jnp.ones((ndf * nf_mult,), jnp.float32),
                       jnp.zeros((ndf * nf_mult,), jnp.float32)))
    cdim = ndf * nf_mult
    mw = _init_conv_weight(keys[n_layers], cdim, cdim, 1, 1)
    lw = _init_conv_weight(keys[n_layers + 1], cdim, cdim, 1, 1)
    ones, zeros = jnp.ones((cdim,), jnp.float32), jnp.zeros((cdim,), jnp.float32)
    return {"blocks": blocks,
            "mean_head": (mw, ones, zeros),
            "logvar_head": (lw, ones, zeros)}


def init_decoder_params(key, in_channels, ndf=64, n_layers=3):
    keys = jax.random.split(key, n_layers)
    ct_bn = []
    # Application order (after the PyTorch sequence reversal):
    #   CT(ndf*min(2^n,8) -> ndf*min(2^{n-1},8), no bias) + BN + ReLU,
    #     for n = n_layers-1 .. 1, then CT(ndf -> in_channels, bias).
    for idx, n in enumerate(range(n_layers - 1, 0, -1)):
        cin = ndf * min(2 ** n, 8)
        cout = ndf * min(2 ** (n - 1), 8)
        w = jax.random.normal(keys[idx], (cin, cout, 4, 4), jnp.float32) * 0.05
        ct_bn.append((w, jnp.ones((cout,), jnp.float32), jnp.zeros((cout,), jnp.float32)))
    kw_, kb_ = jax.random.split(keys[-1])
    wf = jax.random.normal(kw_, (ndf, in_channels, 4, 4), jnp.float32) * 0.05
    bf = jax.random.normal(kb_, (in_channels,), jnp.float32) * 0.05
    return {"ct_bn": ct_bn, "ct_final": (wf, bf)}


# ------------------------------- forward passes ----------------------------

def encoder_forward(x_nchw, params):
    h = jnp.transpose(x_nchw, (0, 2, 3, 1))                   # NCHW -> NHWC once
    for (w, g, bt) in params["blocks"]:
        h = conv2d_bn_relu_nhwc(h, w, g, bt, stride=2, pad=1,
                                out_dtype=jnp.bfloat16)
    # Fuse the two 1x1-conv heads (same input h) into one lane-dense GEMM.
    mw, mg, mbt = params["mean_head"]
    lw, lg, lbt = params["logvar_head"]
    cdim = mw.shape[0]
    w_cat = jnp.concatenate([mw, lw], axis=0)
    g_cat = jnp.concatenate([mg, lg], axis=0)
    b_cat = jnp.concatenate([mbt, lbt], axis=0)
    both = conv2d_bn_relu_nhwc(h, w_cat, g_cat, b_cat, stride=1, pad=0,
                               out_dtype=jnp.float32)
    mean = jnp.transpose(both[..., :cdim], (0, 3, 1, 2))       # back to NCHW
    logvar = jnp.transpose(both[..., cdim:], (0, 3, 1, 2))
    return mean, logvar


def decoder_forward(x_nchw, params):
    h = jnp.transpose(x_nchw, (0, 2, 3, 1))                    # NCHW -> NHWC once
    for (w_ct, g, bt) in params["ct_bn"]:
        h = conv_transpose_bn_relu_nhwc(h, w_ct, g, bt, out_dtype=jnp.bfloat16)
    w_ct, b = params["ct_final"]
    out = conv_transpose_bias_nhwc(h, w_ct, b)
    return jnp.transpose(out, (0, 3, 1, 2))                    # NHWC -> NCHW


# ----------------------------------- main -----------------------------------

if __name__ == "__main__":
    key = jax.random.PRNGKey(0)
    in_channels, ndf, n_layers = 4, 8, 3
    k_x, k_enc, k_dec = jax.random.split(key, 3)

    # role = 'encoder'
    x = jax.random.normal(k_x, (2, in_channels, 16, 16), jnp.float32)
    enc_params = init_encoder_params(k_enc, in_channels, ndf=ndf, n_layers=n_layers)
    enc_fwd = jax.jit(encoder_forward)
    mean, logvar = enc_fwd(x, enc_params)

    # role = 'decoder' (latent -> image), fed with the encoder mean
    dec_params = init_decoder_params(k_dec, in_channels, ndf=ndf, n_layers=n_layers)
    dec_fwd = jax.jit(decoder_forward)
    recon = dec_fwd(mean, dec_params)

    jax.block_until_ready((mean, logvar, recon))

    assert mean.shape == (2, ndf * 4, 2, 2), mean.shape
    assert logvar.shape == (2, ndf * 4, 2, 2), logvar.shape
    assert recon.shape == (2, in_channels, 16, 16), recon.shape
    assert mean.dtype == jnp.float32 and recon.dtype == jnp.float32

    print("KERNEL_OK")
</pallas_src>

<mosaic_0001>
module attributes {stable_mosaic.version = 11 : i64} {
  func.func @_gemm_bn_relu_fused_kernel(%arg0: i32, %arg1: memref<128x128xbf16, #tpu.memory_space<vmem>>, %arg2: memref<128x128xbf16, #tpu.memory_space<vmem>>, %arg3: memref<1x128xf32, #tpu.memory_space<vmem>>, %arg4: memref<1x128xf32, #tpu.memory_space<vmem>>, %arg5: memref<128x128xbf16, #tpu.memory_space<vmem>>) attributes {dimension_semantics = [#tpu.dimension_semantics<parallel>], iteration_bounds = array<i64: 1>, scalar_prefetch = 0 : i64, scratch_operands = 0 : i64, tpu.core_type = #tpu.core_type<tc>, window_params = [{pipeline_mode = #tpu.pipeline_mode<synchronous>, transform_indices = @transform_0, window_bounds = array<i64: 128, 128>}, {transform_indices = @transform_1, window_bounds = array<i64: 128, 128>}, {transform_indices = @transform_2, window_bounds = array<i64: 1, 128>}, {transform_indices = @transform_3, window_bounds = array<i64: 1, 128>}, {transform_indices = @transform_4, window_bounds = array<i64: 128, 128>}]} {
    %c0 = arith.constant 0 : index
    %c0_0 = arith.constant 0 : index
    %0 = vector.load %arg1[%c0, %c0_0] : memref<128x128xbf16, #tpu.memory_space<vmem>>, vector<128x128xbf16>
    %c0_1 = arith.constant 0 : index
    %c0_2 = arith.constant 0 : index
    %1 = vector.load %arg2[%c0_1, %c0_2] : memref<128x128xbf16, #tpu.memory_space<vmem>>, vector<128x128xbf16>
    %cst = arith.constant dense<0.000000e+00> : vector<128x128xf32>
    %2 = tpu.matmul %0, %1, %cst {dimension_numbers = #tpu.dot_dimension_numbers<[1], [0], [0], [1], [0, 0, 1, 1], [], []>} : vector<128x128xbf16>, vector<128x128xbf16>, vector<128x128xf32> -> vector<128x128xf32>
    %cst_3 = arith.constant dense<0.000000e+00> : vector<128xf32>
    %3 = vector.multi_reduction <add>, %2, %cst_3 [0] : vector<128x128xf32> to vector<128xf32>
    %4 = vector.shape_cast %3 : vector<128xf32> to vector<1x128xf32>
    %cst_4 = arith.constant 7.812500e-03 : f32
    %5 = vector.broadcast %cst_4 : f32 to vector<1x128xf32>
    %6 = arith.mulf %4, %5 : vector<1x128xf32>
    %7 = tpu.iota {dimensions = array<i32: 0>} : vector<128x1xi32>
    %c128_i32 = arith.constant 128 : i32
    %8 = vector.broadcast %c128_i32 : i32 to vector<128x1xi32>
    %9 = arith.cmpi slt, %7, %8 : vector<128x1xi32>
    %10 = vector.broadcast %6 : vector<1x128xf32> to vector<128x128xf32>
    %11 = arith.subf %2, %10 : vector<128x128xf32>
    %cst_5 = arith.constant 0.000000e+00 : f32
    %12 = vector.shape_cast %9 : vector<128x1xi1> to vector<128x1xi1>
    %13 = vector.broadcast %12 : vector<128x1xi1> to vector<128x128xi1>
    %14 = vector.broadcast %cst_5 : f32 to vector<128x128xf32>
    %15 = arith.select %13, %11, %14 : vector<128x128xi1>, vector<128x128xf32>
    %16 = arith.mulf %15, %15 : vector<128x128xf32>
    %cst_6 = arith.constant dense<0.000000e+00> : vector<128xf32>
    %17 = vector.multi_reduction <add>, %16, %cst_6 [0] : vector<128x128xf32> to vector<128xf32>
    %18 = vector.shape_cast %17 : vector<128xf32> to vector<1x128xf32>
    %cst_7 = arith.constant 7.812500e-03 : f32
    %19 = vector.broadcast %cst_7 : f32 to vector<1x128xf32>
    %20 = arith.mulf %18, %19 : vector<1x128xf32>
    %c0_8 = arith.constant 0 : index
    %c0_9 = arith.constant 0 : index
    %21 = vector.load %arg3[%c0_8, %c0_9] : memref<1x128xf32, #tpu.memory_space<vmem>>, vector<1x128xf32>
    %cst_10 = arith.constant 9.99999974E-6 : f32
    %22 = vector.broadcast %cst_10 : f32 to vector<1x128xf32>
    %23 = arith.addf %20, %22 : vector<1x128xf32>
    %24 = math.rsqrt %23 : vector<1x128xf32>
    %25 = arith.mulf %21, %24 : vector<1x128xf32>
    %c0_11 = arith.constant 0 : index
    %c0_12 = arith.constant 0 : index
    %26 = vector.load %arg4[%c0_11, %c0_12] : memref<1x128xf32, #tpu.memory_space<vmem>>, vector<1x128xf32>
    %27 = arith.mulf %6, %25 : vector<1x128xf32>
    %28 = arith.subf %26, %27 : vector<1x128xf32>
    %29 = vector.broadcast %25 : vector<1x128xf32> to vector<128x128xf32>
    %30 = arith.mulf %2, %29 : vector<128x128xf32>
    %31 = vector.broadcast %28 : vector<1x128xf32> to vector<128x128xf32>
    %32 = arith.addf %30, %31 : vector<128x128xf32>
    %cst_13 = arith.constant 0.000000e+00 : f32
    %33 = vector.broadcast %cst_13 : f32 to vector<128x128xf32>
    %34 = arith.maximumf %32, %33 : vector<128x128xf32>
    %35 = arith.truncf %34 : vector<128x128xf32> to vector<128x128xbf16>
    %c0_14 = arith.constant 0 : index
    %c0_15 = arith.constant 0 : index
    %36 = vector.load %arg5[%c0_14, %c0_15] : memref<128x128xbf16, #tpu.memory_space<vmem>>, vector<128x128xbf16>
    tpu.vector_store %arg5[%c0_14, %c0_15], %35 {strides = array<i32>} : memref<128x128xbf16, #tpu.memory_space<vmem>>, vector<128x128xbf16>,
    return
  }
  func.func @transform_0(%arg0: i32) -> (i32, i32) {
    %c0_i32 = arith.constant 0 : i32
    %c0_i32_0 = arith.constant 0 : i32
    %c0_i32_1 = arith.constant 0 : i32
    return %c0_i32, %c0_i32_0 : i32, i32
  }
  func.func @transform_1(%arg0: i32) -> (i32, i32) {
    %c0_i32 = arith.constant 0 : i32
    %c0_i32_0 = arith.constant 0 : i32
    return %c0_i32, %arg0 : i32, i32
  }
  func.func @transform_2(%arg0: i32) -> (i32, i32) {
    %c0_i32 = arith.constant 0 : i32
    %c0_i32_0 = arith.constant 0 : i32
    return %c0_i32, %arg0 : i32, i32
  }
  func.func @transform_3(%arg0: i32) -> (i32, i32) {
    %c0_i32 = arith.constant 0 : i32
    %c0_i32_0 = arith.constant 0 : i32
    return %c0_i32, %arg0 : i32, i32
  }
  func.func @transform_4(%arg0: i32) -> (i32, i32) {
    %c0_i32 = arith.constant 0 : i32
    %c0_i32_0 = arith.constant 0 : i32
    return %c0_i32, %arg0 : i32, i32
  }
}

module attributes {stable_mosaic.version = 11 : i64} {
  func.func @_gemm_bn_relu_fused_kernel(%arg0: i32, %arg1: memref<32x128xbf16, #tpu.memory_space<vmem>>, %arg2: memref<128x128xbf16, #tpu.memory_space<vmem>>, %arg3: memref<1x128xf32, #tpu.memory_space<vmem>>, %arg4: memref<1x128xf32, #tpu.memory_space<vmem>>, %arg5: memref<32x128xbf16, #tpu.memory_space<vmem>>) attributes {dimension_semantics = [#tpu.dimension_semantics<parallel>], iteration_bounds = array<i64: 1>, scalar_prefetch = 0 : i64, scratch_operands = 0 : i64, tpu.core_type = #tpu.core_type<tc>, window_params = [{pipeline_mode = #tpu.pipeline_mode<synchronous>, transform_indices = @transform_0, window_bounds = array<i64: 32, 128>}, {transform_indices = @transform_1, window_bounds = array<i64: 128, 128>}, {transform_indices = @transform_2, window_bounds = array<i64: 1, 128>}, {transform_indices = @transform_3, window_bounds = array<i64: 1, 128>}, {transform_indices = @transform_4, window_bounds = array<i64: 32, 128>}]} {
    %c0 = arith.constant 0 : index
    %c0_0 = arith.constant 0 : index
    %0 = vector.load %arg1[%c0, %c0_0] : memref<32x128xbf16, #tpu.memory_space<vmem>>, vector<32x128xbf16>
    %c0_1 = arith.constant 0 : index
    %c0_2 = arith.constant 0 : index
    %1 = vector.load %arg2[%c0_1, %c0_2] : memref<128x128xbf16, #tpu.memory_space<vmem>>, vector<128x128xbf16>
    %cst = arith.constant dense<0.000000e+00> : vector<32x128xf32>
    %2 = tpu.matmul %0, %1, %cst {dimension_numbers = #tpu.dot_dimension_numbers<[1], [0], [0], [1], [0, 0, 1, 1], [], []>} : vector<32x128xbf16>, vector<128x128xbf16>, vector<32x128xf32> -> vector<32x128xf32>
    %cst_3 = arith.constant dense<0.000000e+00> : vector<128xf32>
    %3 = vector.multi_reduction <add>, %2, %cst_3 [0] : vector<32x128xf32> to vector<128xf32>
    %4 = vector.shape_cast %3 : vector<128xf32> to vector<1x128xf32>
    %cst_4 = arith.constant 3.125000e-02 : f32
    %5 = vector.broadcast %cst_4 : f32 to vector<1x128xf32>
    %6 = arith.mulf %4, %5 : vector<1x128xf32>
    %7 = tpu.iota {dimensions = array<i32: 0>} : vector<32x1xi32>
    %c32_i32 = arith.constant 32 : i32
    %8 = vector.broadcast %c32_i32 : i32 to vector<32x1xi32>
    %9 = arith.cmpi slt, %7, %8 : vector<32x1xi32>
    %10 = vector.broadcast %6 : vector<1x128xf32> to vector<32x128xf32>
    %11 = arith.subf %2, %10 : vector<32x128xf32>
    %cst_5 = arith.constant 0.000000e+00 : f32
    %12 = vector.shape_cast %9 : vector<32x1xi1> to vector<32x1xi1>
    %13 = vector.broadcast %12 : vector<32x1xi1> to vector<32x128xi1>
    %14 = vector.broadcast %cst_5 : f32 to vector<32x128xf32>
    %15 = arith.select %13, %11, %14 : vector<32x128xi1>, vector<32x128xf32>
    %16 = arith.mulf %15, %15 : vector<32x128xf32>
    %cst_6 = arith.constant dense<0.000000e+00> : vector<128xf32>
    %17 = vector.multi_reduction <add>, %16, %cst_6 [0] : vector<32x128xf32> to vector<128xf32>
    %18 = vector.shape_cast %17 : vector<128xf32> to vector<1x128xf32>
    %cst_7 = arith.constant 3.125000e-02 : f32
    %19 = vector.broadcast %cst_7 : f32 to vector<1x128xf32>
    %20 = arith.mulf %18, %19 : vector<1x128xf32>
    %c0_8 = arith.constant 0 : index
    %c0_9 = arith.constant 0 : index
    %21 = vector.load %arg3[%c0_8, %c0_9] : memref<1x128xf32, #tpu.memory_space<vmem>>, vector<1x128xf32>
    %cst_10 = arith.constant 9.99999974E-6 : f32
    %22 = vector.broadcast %cst_10 : f32 to vector<1x128xf32>
    %23 = arith.addf %20, %22 : vector<1x128xf32>
    %24 = math.rsqrt %23 : vector<1x128xf32>
    %25 = arith.mulf %21, %24 : vector<1x128xf32>
    %c0_11 = arith.constant 0 : index
    %c0_12 = arith.constant 0 : index
    %26 = vector.load %arg4[%c0_11, %c0_12] : memref<1x128xf32, #tpu.memory_space<vmem>>, vector<1x128xf32>
    %27 = arith.mulf %6, %25 : vector<1x128xf32>
    %28 = arith.subf %26, %27 : vector<1x128xf32>
    %29 = vector.broadcast %25 : vector<1x128xf32> to vector<32x128xf32>
    %30 = arith.mulf %2, %29 : vector<32x128xf32>
    %31 = vector.broadcast %28 : vector<1x128xf32> to vector<32x128xf32>
    %32 = arith.addf %30, %31 : vector<32x128xf32>
    %cst_13 = arith.constant 0.000000e+00 : f32
    %33 = vector.broadcast %cst_13 : f32 to vector<32x128xf32>
    %34 = arith.maximumf %32, %33 : vector<32x128xf32>
    %35 = arith.truncf %34 : vector<32x128xf32> to vector<32x128xbf16>
    %c0_14 = arith.constant 0 : index
    %c0_15 = arith.constant 0 : index
    %36 = vector.load %arg5[%c0_14, %c0_15] : memref<32x128xbf16, #tpu.memory_space<vmem>>, vector<32x128xbf16>
    tpu.vector_store %arg5[%c0_14, %c0_15], %35 {strides = array<i32>} : memref<32x128xbf16, #tpu.memory_space<vmem>>, vector<32x128xbf16>,
    return
  }
  func.func @transform_0(%arg0: i32) -> (i32, i32) {
    %c0_i32 = arith.constant 0 : i32
    %c0_i32_0 = arith.constant 0 : i32
    %c0_i32_1 = arith.constant 0 : i32
    return %c0_i32, %c0_i32_0 : i32, i32
  }
  func.func @transform_1(%arg0: i32) -> (i32, i32) {
    %c0_i32 = arith.constant 0 : i32
    %c0_i32_0 = arith.constant 0 : i32
    return %c0_i32, %arg0 : i32, i32
  }
  func.func @transform_2(%arg0: i32) -> (i32, i32) {
    %c0_i32 = arith.constant 0 : i32
    %c0_i32_0 = arith.constant 0 : i32
    return %c0_i32, %arg0 : i32, i32
  }
  func.func @transform_3(%arg0: i32) -> (i32, i32) {
    %c0_i32 = arith.constant 0 : i32
    %c0_i32_0 = arith.constant 0 : i32
    return %c0_i32, %arg0 : i32, i32
  }
  func.func @transform_4(%arg0: i32) -> (i32, i32) {
    %c0_i32 = arith.constant 0 : i32
    %c0_i32_0 = arith.constant 0 : i32
    return %c0_i32, %arg0 : i32, i32
  }
}

module attributes {stable_mosaic.version = 11 : i64} {
  func.func @_gemm_bn_relu_fused_kernel(%arg0: i32, %arg1: memref<8x256xbf16, #tpu.memory_space<vmem>>, %arg2: memref<256x128xbf16, #tpu.memory_space<vmem>>, %arg3: memref<1x128xf32, #tpu.memory_space<vmem>>, %arg4: memref<1x128xf32, #tpu.memory_space<vmem>>, %arg5: memref<8x128xbf16, #tpu.memory_space<vmem>>) attributes {dimension_semantics = [#tpu.dimension_semantics<parallel>], iteration_bounds = array<i64: 1>, scalar_prefetch = 0 : i64, scratch_operands = 0 : i64, tpu.core_type = #tpu.core_type<tc>, window_params = [{pipeline_mode = #tpu.pipeline_mode<synchronous>, transform_indices = @transform_0, window_bounds = array<i64: 8, 256>}, {transform_indices = @transform_1, window_bounds = array<i64: 256, 128>}, {transform_indices = @transform_2, window_bounds = array<i64: 1, 128>}, {transform_indices = @transform_3, window_bounds = array<i64: 1, 128>}, {transform_indices = @transform_4, window_bounds = array<i64: 8, 128>}]} {
    %c0 = arith.constant 0 : index
    %c0_0 = arith.constant 0 : index
    %0 = vector.load %arg1[%c0, %c0_0] : memref<8x256xbf16, #tpu.memory_space<vmem>>, vector<8x256xbf16>
    %c0_1 = arith.constant 0 : index
    %c0_2 = arith.constant 0 : index
    %1 = vector.load %arg2[%c0_1, %c0_2] : memref<256x128xbf16, #tpu.memory_space<vmem>>, vector<256x128xbf16>
    %cst = arith.constant dense<0.000000e+00> : vector<8x128xf32>
    %2 = tpu.matmul %0, %1, %cst {dimension_numbers = #tpu.dot_dimension_numbers<[1], [0], [0], [1], [0, 0, 1, 1], [], []>} : vector<8x256xbf16>, vector<256x128xbf16>, vector<8x128xf32> -> vector<8x128xf32>
    %cst_3 = arith.constant dense<0.000000e+00> : vector<128xf32>
    %3 = vector.multi_reduction <add>, %2, %cst_3 [0] : vector<8x128xf32> to vector<128xf32>
    %4 = vector.shape_cast %3 : vector<128xf32> to vector<1x128xf32>
    %cst_4 = arith.constant 1.250000e-01 : f32
    %5 = vector.broadcast %cst_4 : f32 to vector<1x128xf32>
    %6 = arith.mulf %4, %5 : vector<1x128xf32>
    %7 = tpu.iota {dimensions = array<i32: 0>} : vector<8x1xi32>
    %c8_i32 = arith.constant 8 : i32
    %8 = vector.broadcast %c8_i32 : i32 to vector<8x1xi32>
    %9 = arith.cmpi slt, %7, %8 : vector<8x1xi32>
    %10 = vector.broadcast %6 : vector<1x128xf32> to vector<8x128xf32>
    %11 = arith.subf %2, %10 : vector<8x128xf32>
    %cst_5 = arith.constant 0.000000e+00 : f32
    %12 = vector.shape_cast %9 : vector<8x1xi1> to vector<8x1xi1>
    %13 = vector.broadcast %12 : vector<8x1xi1> to vector<8x128xi1>
    %14 = vector.broadcast %cst_5 : f32 to vector<8x128xf32>
    %15 = arith.select %13, %11, %14 : vector<8x128xi1>, vector<8x128xf32>
    %16 = arith.mulf %15, %15 : vector<8x128xf32>
    %cst_6 = arith.constant dense<0.000000e+00> : vector<128xf32>
    %17 = vector.multi_reduction <add>, %16, %cst_6 [0] : vector<8x128xf32> to vector<128xf32>
    %18 = vector.shape_cast %17 : vector<128xf32> to vector<1x128xf32>
    %cst_7 = arith.constant 1.250000e-01 : f32
    %19 = vector.broadcast %cst_7 : f32 to vector<1x128xf32>
    %20 = arith.mulf %18, %19 : vector<1x128xf32>
    %c0_8 = arith.constant 0 : index
    %c0_9 = arith.constant 0 : index
    %21 = vector.load %arg3[%c0_8, %c0_9] : memref<1x128xf32, #tpu.memory_space<vmem>>, vector<1x128xf32>
    %cst_10 = arith.constant 9.99999974E-6 : f32
    %22 = vector.broadcast %cst_10 : f32 to vector<1x128xf32>
    %23 = arith.addf %20, %22 : vector<1x128xf32>
    %24 = math.rsqrt %23 : vector<1x128xf32>
    %25 = arith.mulf %21, %24 : vector<1x128xf32>
    %c0_11 = arith.constant 0 : index
    %c0_12 = arith.constant 0 : index
    %26 = vector.load %arg4[%c0_11, %c0_12] : memref<1x128xf32, #tpu.memory_space<vmem>>, vector<1x128xf32>
    %27 = arith.mulf %6, %25 : vector<1x128xf32>
    %28 = arith.subf %26, %27 : vector<1x128xf32>
    %29 = vector.broadcast %25 : vector<1x128xf32> to vector<8x128xf32>
    %30 = arith.mulf %2, %29 : vector<8x128xf32>
    %31 = vector.broadcast %28 : vector<1x128xf32> to vector<8x128xf32>
    %32 = arith.addf %30, %31 : vector<8x128xf32>
    %cst_13 = arith.constant 0.000000e+00 : f32
    %33 = vector.broadcast %cst_13 : f32 to vector<8x128xf32>
    %34 = arith.maximumf %32, %33 : vector<8x128xf32>
    %35 = arith.truncf %34 : vector<8x128xf32> to vector<8x128xbf16>
    %c0_14 = arith.constant 0 : index
    %c0_15 = arith.constant 0 : index
    %36 = vector.load %arg5[%c0_14, %c0_15] : memref<8x128xbf16, #tpu.memory_space<vmem>>, vector<8x128xbf16>
    tpu.vector_store %arg5[%c0_14, %c0_15], %35 {strides = array<i32>} : memref<8x128xbf16, #tpu.memory_space<vmem>>, vector<8x128xbf16>,
    return
  }
  func.func @transform_0(%arg0: i32) -> (i32, i32) {
    %c0_i32 = arith.constant 0 : i32
    %c0_i32_0 = arith.constant 0 : i32
    %c0_i32_1 = arith.constant 0 : i32
    return %c0_i32, %c0_i32_0 : i32, i32
  }
  func.func @transform_1(%arg0: i32) -> (i32, i32) {
    %c0_i32 = arith.constant 0 : i32
    %c0_i32_0 = arith.constant 0 : i32
    return %c0_i32, %arg0 : i32, i32
  }
  func.func @transform_2(%arg0: i32) -> (i32, i32) {
    %c0_i32 = arith.constant 0 : i32
    %c0_i32_0 = arith.constant 0 : i32
    return %c0_i32, %arg0 : i32, i32
  }
  func.func @transform_3(%arg0: i32) -> (i32, i32) {
    %c0_i32 = arith.constant 0 : i32
    %c0_i32_0 = arith.constant 0 : i32
    return %c0_i32, %arg0 : i32, i32
  }
  func.func @transform_4(%arg0: i32) -> (i32, i32) {
    %c0_i32 = arith.constant 0 : i32
    %c0_i32_0 = arith.constant 0 : i32
    return %c0_i32, %arg0 : i32, i32
  }
}

module attributes {stable_mosaic.version = 11 : i64} {
  func.func @_gemm_bn_relu_fused_kernel(%arg0: i32, %arg1: memref<8x128xbf16, #tpu.memory_space<vmem>>, %arg2: memref<128x128xbf16, #tpu.memory_space<vmem>>, %arg3: memref<1x128xf32, #tpu.memory_space<vmem>>, %arg4: memref<1x128xf32, #tpu.memory_space<vmem>>, %arg5: memref<8x128xf32, #tpu.memory_space<vmem>>) attributes {dimension_semantics = [#tpu.dimension_semantics<parallel>], iteration_bounds = array<i64: 1>, scalar_prefetch = 0 : i64, scratch_operands = 0 : i64, tpu.core_type = #tpu.core_type<tc>, window_params = [{pipeline_mode = #tpu.pipeline_mode<synchronous>, transform_indices = @transform_0, window_bounds = array<i64: 8, 128>}, {transform_indices = @transform_1, window_bounds = array<i64: 128, 128>}, {transform_indices = @transform_2, window_bounds = array<i64: 1, 128>}, {transform_indices = @transform_3, window_bounds = array<i64: 1, 128>}, {transform_indices = @transform_4, window_bounds = array<i64: 8, 128>}]} {
    %c0 = arith.constant 0 : index
    %c0_0 = arith.constant 0 : index
    %0 = vector.load %arg1[%c0, %c0_0] : memref<8x128xbf16, #tpu.memory_space<vmem>>, vector<8x128xbf16>
    %c0_1 = arith.constant 0 : index
    %c0_2 = arith.constant 0 : index
    %1 = vector.load %arg2[%c0_1, %c0_2] : memref<128x128xbf16, #tpu.memory_space<vmem>>, vector<128x128xbf16>
    %cst = arith.constant dense<0.000000e+00> : vector<8x128xf32>
    %2 = tpu.matmul %0, %1, %cst {dimension_numbers = #tpu.dot_dimension_numbers<[1], [0], [0], [1], [0, 0, 1, 1], [], []>} : vector<8x128xbf16>, vector<128x128xbf16>, vector<8x128xf32> -> vector<8x128xf32>
    %cst_3 = arith.constant dense<0.000000e+00> : vector<128xf32>
    %3 = vector.multi_reduction <add>, %2, %cst_3 [0] : vector<8x128xf32> to vector<128xf32>
    %4 = vector.shape_cast %3 : vector<128xf32> to vector<1x128xf32>
    %cst_4 = arith.constant 1.250000e-01 : f32
    %5 = vector.broadcast %cst_4 : f32 to vector<1x128xf32>
    %6 = arith.mulf %4, %5 : vector<1x128xf32>
    %7 = tpu.iota {dimensions = array<i32: 0>} : vector<8x1xi32>
    %c8_i32 = arith.constant 8 : i32
    %8 = vector.broadcast %c8_i32 : i32 to vector<8x1xi32>
    %9 = arith.cmpi slt, %7, %8 : vector<8x1xi32>
    %10 = vector.broadcast %6 : vector<1x128xf32> to vector<8x128xf32>
    %11 = arith.subf %2, %10 : vector<8x128xf32>
    %cst_5 = arith.constant 0.000000e+00 : f32
    %12 = vector.shape_cast %9 : vector<8x1xi1> to vector<8x1xi1>
    %13 = vector.broadcast %12 : vector<8x1xi1> to vector<8x128xi1>
    %14 = vector.broadcast %cst_5 : f32 to vector<8x128xf32>
    %15 = arith.select %13, %11, %14 : vector<8x128xi1>, vector<8x128xf32>
    %16 = arith.mulf %15, %15 : vector<8x128xf32>
    %cst_6 = arith.constant dense<0.000000e+00> : vector<128xf32>
    %17 = vector.multi_reduction <add>, %16, %cst_6 [0] : vector<8x128xf32> to vector<128xf32>
    %18 = vector.shape_cast %17 : vector<128xf32> to vector<1x128xf32>
    %cst_7 = arith.constant 1.250000e-01 : f32
    %19 = vector.broadcast %cst_7 : f32 to vector<1x128xf32>
    %20 = arith.mulf %18, %19 : vector<1x128xf32>
    %c0_8 = arith.constant 0 : index
    %c0_9 = arith.constant 0 : index
    %21 = vector.load %arg3[%c0_8, %c0_9] : memref<1x128xf32, #tpu.memory_space<vmem>>, vector<1x128xf32>
    %cst_10 = arith.constant 9.99999974E-6 : f32
    %22 = vector.broadcast %cst_10 : f32 to vector<1x128xf32>
    %23 = arith.addf %20, %22 : vector<1x128xf32>
    %24 = math.rsqrt %23 : vector<1x128xf32>
    %25 = arith.mulf %21, %24 : vector<1x128xf32>
    %c0_11 = arith.constant 0 : index
    %c0_12 = arith.constant 0 : index
    %26 = vector.load %arg4[%c0_11, %c0_12] : memref<1x128xf32, #tpu.memory_space<vmem>>, vector<1x128xf32>
    %27 = arith.mulf %6, %25 : vector<1x128xf32>
    %28 = arith.subf %26, %27 : vector<1x128xf32>
    %29 = vector.broadcast %25 : vector<1x128xf32> to vector<8x128xf32>
    %30 = arith.mulf %2, %29 : vector<8x128xf32>
    %31 = vector.broadcast %28 : vector<1x128xf32> to vector<8x128xf32>
    %32 = arith.addf %30, %31 : vector<8x128xf32>
    %cst_13 = arith.constant 0.000000e+00 : f32
    %33 = vector.broadcast %cst_13 : f32 to vector<8x128xf32>
    %34 = arith.maximumf %32, %33 : vector<8x128xf32>
    %c0_14 = arith.constant 0 : index
    %c0_15 = arith.constant 0 : index
    %35 = vector.load %arg5[%c0_14, %c0_15] : memref<8x128xf32, #tpu.memory_space<vmem>>, vector<8x128xf32>
    tpu.vector_store %arg5[%c0_14, %c0_15], %34 {strides = array<i32>} : memref<8x128xf32, #tpu.memory_space<vmem>>, vector<8x128xf32>,
    return
  }
  func.func @transform_0(%arg0: i32) -> (i32, i32) {
    %c0_i32 = arith.constant 0 : i32
    %c0_i32_0 = arith.constant 0 : i32
    %c0_i32_1 = arith.constant 0 : i32
    return %c0_i32, %c0_i32_0 : i32, i32
  }
  func.func @transform_1(%arg0: i32) -> (i32, i32) {
    %c0_i32 = arith.constant 0 : i32
    %c0_i32_0 = arith.constant 0 : i32
    return %c0_i32, %arg0 : i32, i32
  }
  func.func @transform_2(%arg0: i32) -> (i32, i32) {
    %c0_i32 = arith.constant 0 : i32
    %c0_i32_0 = arith.constant 0 : i32
    return %c0_i32, %arg0 : i32, i32
  }
  func.func @transform_3(%arg0: i32) -> (i32, i32) {
    %c0_i32 = arith.constant 0 : i32
    %c0_i32_0 = arith.constant 0 : i32
    return %c0_i32, %arg0 : i32, i32
  }
  func.func @transform_4(%arg0: i32) -> (i32, i32) {
    %c0_i32 = arith.constant 0 : i32
    %c0_i32_0 = arith.constant 0 : i32
    return %c0_i32, %arg0 : i32, i32
  }
}

</mosaic_0001>

<bundles_post_ra>
// kernel: encoder_forward.4
= control target key start
LH: loop header
LB: loop body
LE: loop exit
PB: predicated region body
PF: predicated region fallthrough
CT: control target
= control target key end

     0   :  { %s812_s1 = inlined_call_operand.vmem [shape: bf16[128,128], index: 1, kind: input, shape index: {}]   ;;  %s813_s0 = inlined_call_operand.vmem [shape: bf16[128,128], index: 0, kind: input, shape index: {}]   ;;  %s814_s2 = inlined_call_operand.vmem [shape: f32[1,128], index: 2, kind: input, shape index: {}]   ;;  %s815_s3 = inlined_call_operand.vmem [shape: f32[1,128], index: 3, kind: input, shape index: {}]   ;;  %s816_s4 = inlined_call_operand.vmem [shape: bf16[128,128], index: 4, kind: output, shape index: {}]  }
   0x1   :  { %v536_v0 = vld [vmem:[%s812_s1 + $0x38] sm:$0xff]  ;;  %v535_v1 = vld [vmem:[%s812_s1 + $0x30] sm:$0xff]  ;;  %v534_v2 = vld [vmem:[%s812_s1 + $0x28] sm:$0xff] }
   0x2   :  { %145 = vmatpush.bf16.msra.mxu0 %v536_v0  ;;  %584 = vmatpush.bf16.msra.mxu1 %v536_v0  ;;  %v533_v3 = vld [vmem:[%s812_s1 + $0x20] sm:$0xff]  ;;  %v532_v4 = vld [vmem:[%s812_s1 + $0x18] sm:$0xff]  ;;  %v531_v5 = vld [vmem:[%s812_s1 + $0x10] sm:$0xff] }
   0x3   :  { %585 = vmatpush.bf16.msra.mxu2 %v536_v0  ;;  %586 = vmatpush.bf16.msra.mxu3 %v536_v0  ;;  %v530_v6 = vld [vmem:[%s812_s1 + $0x8] sm:$0xff]  ;;  %v529_v7 = vld [vmem:[%s812_s1] sm:$0xff]  ;;  %v523_v9 = vld [vmem:[%s813_s0 + $0x10] sm:$0xff] }
   0x4   :  { %v521_v8 = vld [vmem:[%s813_s0] sm:$0xff]  ;;  %v527_v11 = vld [vmem:[%s813_s0 + $0x30] sm:$0xff]  ;;  %v522_v12 = vld [vmem:[%s813_s0 + $0x8] sm:$0xff] }
   0x5   :  { %v525_v10 = vld [vmem:[%s813_s0 + $0x20] sm:$0xff]  ;;  %v524_v13 = vld [vmem:[%s813_s0 + $0x18] sm:$0xff]  ;;  %v526_v14 = vld [vmem:[%s813_s0 + $0x28] sm:$0xff] }
   0x6   :  { %146 = vmatpush.bf16.msra.mxu0 %v535_v1  ;;  %587 = vmatpush.bf16.msra.mxu1 %v535_v1  ;;  %v528_v15 = vld [vmem:[%s813_s0 + $0x38] sm:$0xff] }
   0x7   :  { %588 = vmatpush.bf16.msra.mxu2 %v535_v1  ;;  %589 = vmatpush.bf16.msra.mxu3 %v535_v1 }
   0xa   :  { %147 = vmatpush.bf16.msra.mxu0 %v534_v2  ;;  %590 = vmatpush.bf16.msra.mxu1 %v534_v2 }
   0xb   :  { %591 = vmatpush.bf16.msra.mxu2 %v534_v2  ;;  %592 = vmatpush.bf16.msra.mxu3 %v534_v2 }
   0xe   :  { %148 = vmatpush.bf16.msra.mxu0 %v533_v3  ;;  %593 = vmatpush.bf16.msra.mxu1 %v533_v3 }
   0xf   :  { %594 = vmatpush.bf16.msra.mxu2 %v533_v3  ;;  %595 = vmatpush.bf16.msra.mxu3 %v533_v3 }
  0x12   :  { %149 = vmatpush.bf16.msra.mxu0 %v532_v4  ;;  %596 = vmatpush.bf16.msra.mxu1 %v532_v4 }
  0x13   :  { %597 = vmatpush.bf16.msra.mxu2 %v532_v4  ;;  %598 = vmatpush.bf16.msra.mxu3 %v532_v4 }
  0x16   :  { %150 = vmatpush.bf16.msra.mxu0 %v531_v5  ;;  %599 = vmatpush.bf16.msra.mxu1 %v531_v5 }
  0x17   :  { %600 = vmatpush.bf16.msra.mxu2 %v531_v5  ;;  %601 = vmatpush.bf16.msra.mxu3 %v531_v5 }
  0x1a   :  { %151 = vmatpush.bf16.msra.mxu0 %v530_v6  ;;  %602 = vmatpush.bf16.msra.mxu1 %v530_v6 }
  0x1b   :  { %603 = vmatpush.bf16.msra.mxu2 %v530_v6  ;;  %604 = vmatpush.bf16.msra.mxu3 %v530_v6 }
  0x1e   :  { %152 = vmatpush.bf16.msra.mxu0 %v529_v7  ;;  %605 = vmatpush.bf16.msra.mxu1 %v529_v7 }
  0x1f   :  { %606 = vmatpush.bf16.msra.mxu2 %v529_v7  ;;  %607 = vmatpush.bf16.msra.mxu3 %v529_v7 }
  0x21   :  { %153 = vmatmul.bf16.vlgmr.msra.gmra.mxu0 %v521_v8  ;;  %163 = vmatmul.bf16.vlgmr.msra.gmra.mxu1 %v523_v9 }
  0x22   :  { %173 = vmatmul.bf16.vlgmr.msra.gmra.mxu2 %v525_v10  ;;  %183 = vmatmul.bf16.vlgmr.msra.gmra.mxu3 %v527_v11 }
  0x31   :  { %158 = vmatmul.bf16.gmra.mxu0 %v522_v12  ;;  %168 = vmatmul.bf16.gmra.mxu1 %v524_v13 }
  0x32   :  { %178 = vmatmul.bf16.gmra.mxu2 %v526_v14  ;;  %188 = vmatmul.bf16.gmra.mxu3 %v528_v15 }
  0x9e   :  { %v683_v16 = vpop.f32.mrf.mxu0  ;;  %v685_v17 = vpop.f32.mrf.mxu1 }
  0xa5   :  { %v689_v19 = vpop.f32.mrf.mxu2  ;;  %v695_v22 = vpop.f32.mrf.mxu3 }
  0xa6   :  { %v687_v18 = vpop.f32.mrf.mxu0  ;;  %v691_v20 = vpop.f32.mrf.mxu1 }
  0xa7   :  { %v194_v24 = vadd.f32 %v687_v18, %v683_v16 }
  0xad   :  { %v697_v23 = vpop.f32.mrf.mxu2  ;;  %v708_v30 = vpop.f32.mrf.mxu3 }
  0xae   :  { %v693_v21 = vpop.f32.mrf.mxu0  ;;  %v701_v25 = vpop.f32.mrf.mxu1 }
  0xaf   :  { %v195_v26 = vadd.f32 %v194_v24, %v693_v21 }
  0xb5   :  { %v711_v32 = vpop.f32.mrf.mxu2  ;;  %v719_v38 = vpop.f32.mrf.mxu3 }
  0xb6   :  { %v704_v27 = vpop.f32.mrf.mxu0  ;;  %v714_v34 = vpop.f32.mrf.mxu1 }
  0xb7   :  { %v196_v28 = vadd.f32 %v195_v26, %v704_v27 }
  0xb9   :  { %v197_v29 = vadd.f32 %v196_v28, %v685_v17 }
  0xbb   :  { %v198_v31 = vadd.f32 %v197_v29, %v691_v20 }
  0xbd   :  { %v199_v33 = vadd.f32 %v198_v31, %v701_v25  ;;  %v722_v40 = vpop.f32.mrf.mxu2  ;;  %v728_v45 = vpop.f32.mrf.mxu3 }
  0xbf   :  { %v200_v35 = vadd.f32 %v199_v33, %v714_v34 }
  0xc1   :  { %v201_v36 = vadd.f32 %v200_v35, %v689_v19 }
  0xc3   :  { %v202_v37 = vadd.f32 %v201_v36, %v697_v23 }
  0xc5   :  { %v203_v39 = vadd.f32 %v202_v37, %v711_v32 }
  0xc7   :  { %v204_v41 = vadd.f32 %v203_v39, %v722_v40 }
  0xc9   :  { %v205_v42 = vadd.f32 %v204_v41, %v695_v22 }
  0xcb   :  { %v206_v43 = vadd.f32 %v205_v42, %v708_v30 }
  0xcd   :  { %v207_v44 = vadd.f32 %v206_v43, %v719_v38 }
  0xcf   :  { %v208_v46 = vadd.f32 %v207_v44, %v728_v45 }
  0xd1   :  { %v209_v47 = vrot.slane %v208_v46, 4 }
  0xd3   :  { %v210_v48 = vadd.f32 %v209_v47, %v208_v46 }
  0xd5   :  { %v211_v49 = vrot.slane %v210_v48, 2 }
  0xd7   :  { %v212_v50 = vadd.f32 %v211_v49, %v210_v48 }
  0xd9   :  { %v213_v51 = vrot.slane %v212_v50, 1 }
  0xdb   :  { %v214_v52 = vadd.f32 %v213_v51, %v212_v50 }
  0xdd   :  { %v731_v53 = vmul.f32 0.0078125, %v214_v52 }
  0xdf   :  { %v249_v54 = vsub.f32 %v683_v16, %v731_v53  ;;  %v250_v55 = vsub.f32 %v687_v18, %v731_v53  ;;  %v251_v56 = vsub.f32 %v693_v21, %v731_v53  ;;  %v252_v59 = vsub.f32 %v704_v27, %v731_v53 }
  0xe0   :  { %v253_v60 = vsub.f32 %v685_v17, %v731_v53  ;;  %v254_v63 = vsub.f32 %v691_v20, %v731_v53  ;;  %v255_v2 = vsub.f32 %v701_v25, %v731_v53  ;;  %v256_v5 = vsub.f32 %v714_v34, %v731_v53 }
  0xe1   :  { %v313_v57 = vmul.f32 %v249_v54, %v249_v54  ;;  %v314_v58 = vmul.f32 %v250_v55, %v250_v55  ;;  %v315_v61 = vmul.f32 %v251_v56, %v251_v56  ;;  %v316_v0 = vmul.f32 %v252_v59, %v252_v59 }
  0xe2   :  { %v317_v3 = vmul.f32 %v253_v60, %v253_v60  ;;  %v318_v6 = vmul.f32 %v254_v63, %v254_v63  ;;  %v257_v8 = vsub.f32 %v689_v19, %v731_v53  ;;  %v319_v9 = vmul.f32 %v255_v2, %v255_v2 }
  0xe3   :  { %v329_v62 = vadd.f32 %v314_v58, %v313_v57  ;;  %v258_v11 = vsub.f32 %v697_v23, %v731_v53  ;;  %v320_v12 = vmul.f32 %v256_v5, %v256_v5  ;;  %v259_v14 = vsub.f32 %v711_v32, %v731_v53 }
  0xe4   :  { %v321_v15 = vmul.f32 %v257_v8, %v257_v8  ;;  %v260_v26 = vsub.f32 %v722_v40, %v731_v53  ;;  %v261_v31 = vsub.f32 %v695_v22, %v731_v53  ;;  %v262_v36 = vsub.f32 %v708_v30, %v731_v53 }
  0xe5   :  { %v330_v1 = vadd.f32 %v329_v62, %v315_v61  ;;  %v322_v28 = vmul.f32 %v258_v11, %v258_v11  ;;  %v323_v33 = vmul.f32 %v259_v14, %v259_v14  ;;  %v263_v41 = vsub.f32 %v719_v38, %v731_v53 }
  0xe6   :  { %v324_v37 = vmul.f32 %v260_v26, %v260_v26  ;;  %v325_v42 = vmul.f32 %v261_v31, %v261_v31  ;;  %v264_v44 = vsub.f32 %v728_v45, %v731_v53  ;;  %v326_v46 = vmul.f32 %v262_v36, %v262_v36 }
  0xe7   :  { %v331_v4 = vadd.f32 %v330_v1, %v316_v0  ;;  %v327_v48 = vmul.f32 %v263_v41, %v263_v41 }
  0xe8   :  { %v328_v50 = vmul.f32 %v264_v44, %v264_v44 }
  0xe9   :  { %v332_v7 = vadd.f32 %v331_v4, %v317_v3  ;;  %v351_v3 = vld [vmem:[%s814_s2] sm:$0x1] }
  0xeb   :  { %v333_v10 = vadd.f32 %v332_v7, %v318_v6  ;;  %v364_v7 = vld [vmem:[%s815_s3] sm:$0x1] }
  0xed   :  { %v334_v13 = vadd.f32 %v333_v10, %v319_v9 }
  0xef   :  { %v335_v24 = vadd.f32 %v334_v13, %v320_v12 }
  0xf1   :  { %v336_v29 = vadd.f32 %v335_v24, %v321_v15 }
  0xf3   :  { %v337_v35 = vadd.f32 %v336_v29, %v322_v28 }
  0xf5   :  { %v338_v39 = vadd.f32 %v337_v35, %v323_v33 }
  0xf7   :  { %v339_v43 = vadd.f32 %v338_v39, %v324_v37 }
  0xf9   :  { %v340_v47 = vadd.f32 %v339_v43, %v325_v42 }
  0xfb   :  { %v341_v49 = vadd.f32 %v340_v47, %v326_v46 }
  0xfd   :  { %v342_v51 = vadd.f32 %v341_v49, %v327_v48 }
  0xff   :  { %v343_v52 = vadd.f32 %v342_v51, %v328_v50 }
 0x101   :  { %v344_v54 = vrot.slane %v343_v52, 4 }
 0x103   :  { %v345_v55 = vadd.f32 %v344_v54, %v343_v52 }
 0x105   :  { %v346_v56 = vrot.slane %v345_v55, 2 }
 0x107   :  { %v347_v57 = vadd.f32 %v346_v56, %v345_v55 }
 0x109   :  { %v348_v58 = vrot.slane %v347_v57, 1 }
 0x10b   :  { %v349_v59 = vadd.f32 %v348_v58, %v347_v57 }
 0x10d   :  { %v350_v60 = vmul.f32 0.0078125, %v349_v59 }
 0x10f   :  { %v352_v61 = vadd.f32 1e-05, %v350_v60 }
 0x111   :  { %608 = vrsqrt.f32 %v352_v61  ;;  %vm359_vm1 = vweird.f32 %v352_v61 }
 0x117   :  { %v609_v62 = vpop.eup %608 }
 0x118   :  { %v354_v63 = vmul.f32 %v609_v62, %v352_v61  ;;  %vm360_vm0 = vweird.f32 %v609_v62 }
 0x119   :  { %vm361_vm2 = vmor %vm359_vm1, %vm360_vm0 }
 0x11a   :  { %v355_v0 = vmul.f32 %v609_v62, %v354_v63 }
 0x11c   :  { %v356_v1 = vmul.f32 0.5, %v355_v0 }
 0x11e   :  { %v357_v2 = vsub.f32 1.5, %v356_v1 }
 0x120   :  { %v358_v4 = vmul.f32 %v609_v62, %v357_v2 }
 0x122   :  { %v362_v5 = vsel %vm361_vm2, %v609_v62, %v358_v4 }
 0x123   :  { %v363_v6 = vmul.f32 %v362_v5, %v351_v3 }
 0x125   :  { %v365_v8 = vmul.f32 %v363_v6, %v731_v53  ;;  %v368_v9 = vperm.slane %v363_v6, 0 }
 0x127   :  { %v366_v10 = vsub.f32 %v364_v7, %v365_v8  ;;  %v370_v11 = vmul.f32 %v368_v9, %v683_v16  ;;  %v371_v12 = vmul.f32 %v368_v9, %v687_v18  ;;  %v372_v13 = vmul.f32 %v368_v9, %v693_v21 }
 0x128   :  { %v373_v14 = vmul.f32 %v368_v9, %v704_v27  ;;  %v374_v15 = vmul.f32 %v368_v9, %v685_v17  ;;  %v375_v24 = vmul.f32 %v368_v9, %v691_v20  ;;  %v376_v26 = vmul.f32 %v368_v9, %v701_v25 }
 0x129   :  { %v377_v28 = vmul.f32 %v368_v9, %v714_v34  ;;  %v378_v53 = vmul.f32 %v368_v9, %v689_v19  ;;  %v379_v29 = vmul.f32 %v368_v9, %v697_v23  ;;  %v380_v16 = vmul.f32 %v368_v9, %v711_v32 }
 0x12a   :  { %v381_v18 = vmul.f32 %v368_v9, %v722_v40  ;;  %v387_v31 = vperm.slane %v366_v10, 0  ;;  %v382_v21 = vmul.f32 %v368_v9, %v695_v22  ;;  %v383_v27 = vmul.f32 %v368_v9, %v708_v30 }
 0x12b   :  { %v384_v17 = vmul.f32 %v368_v9, %v719_v38  ;;  %v385_v20 = vmul.f32 %v368_v9, %v728_v45 }
 0x12c   :  { %v389_v25 = vadd.f32 %v387_v31, %v370_v11  ;;  %v390_v33 = vadd.f32 %v387_v31, %v371_v12  ;;  %v391_v34 = vadd.f32 %v387_v31, %v372_v13  ;;  %v392_v35 = vadd.f32 %v387_v31, %v373_v14 }
 0x12d   :  { %v393_v19 = vadd.f32 %v387_v31, %v374_v15  ;;  %v394_v36 = vadd.f32 %v387_v31, %v375_v24  ;;  %v395_v23 = vadd.f32 %v387_v31, %v376_v26  ;;  %v396_v37 = vadd.f32 %v387_v31, %v377_v28 }
 0x12e   :  { %v397_v32 = vadd.f32 %v387_v31, %v378_v53  ;;  %v398_v39 = vadd.f32 %v387_v31, %v379_v29  ;;  %v399_v40 = vadd.f32 %v387_v31, %v380_v16  ;;  %v400_v41 = vadd.f32 %v387_v31, %v381_v18 }
 0x12f   :  { %v401_v42 = vadd.f32 %v387_v31, %v382_v21  ;;  %v402_v22 = vadd.f32 %v387_v31, %v383_v27  ;;  %v403_v43 = vadd.f32 %v387_v31, %v384_v17  ;;  %v404_v30 = vadd.f32 %v387_v31, %v385_v20 }
 0x130   :  { %v405_v44 = vmax.f32 %v389_v25, 0.0  ;;  %v406_v38 = vmax.f32 %v390_v33, 0.0  ;;  %v407_v46 = vmax.f32 %v391_v34, 0.0  ;;  %v408_v45 = vmax.f32 %v392_v35, 0.0 }
 0x131   :  { %v409_v47 = vmax.f32 %v393_v19, 0.0  ;;  %v410_v48 = vmax.f32 %v394_v36, 0.0  ;;  %v411_v49 = vmax.f32 %v395_v23, 0.0  ;;  %v412_v50 = vmax.f32 %v396_v37, 0.0 }
 0x132   :  { %v413_v51 = vmax.f32 %v397_v32, 0.0  ;;  %v414_v52 = vmax.f32 %v398_v39, 0.0  ;;  %v415_v54 = vmax.f32 %v399_v40, 0.0  ;;  %v416_v55 = vmax.f32 %v400_v41, 0.0 }
 0x133   :  { %v417_v56 = vmax.f32 %v401_v42, 0.0  ;;  %v418_v57 = vmax.f32 %v402_v22, 0.0  ;;  %v540_v58 = vpack.c.bf16 %v406_v38, %v405_v44  ;;  %v545_v59 = vpack.c.bf16 %v408_v45, %v407_v46 }
 0x134   :  { %v550_v60 = vpack.c.bf16 %v410_v48, %v409_v47  ;;  %v419_v61 = vmax.f32 %v403_v43, 0.0  ;;  %v420_v62 = vmax.f32 %v404_v30, 0.0  ;;  %v555_v63 = vpack.c.bf16 %v412_v50, %v411_v49 }
 0x135   :  { %541 = vst [vmem:[%s816_s4] sm:$0xff] %v540_v58   ;;  %v560_v0 = vpack.c.bf16 %v414_v52, %v413_v51  ;;  %v565_v1 = vpack.c.bf16 %v416_v55, %v415_v54  ;;  %v570_v2 = vpack.c.bf16 %v418_v57, %v417_v56 }
 0x136   :  { %577 = vst [vmem:[%s816_s4 + $0x8] sm:$0xff] %v545_v59   ;;  %v575_v3 = vpack.c.bf16 %v420_v62, %v419_v61 }
 0x137   :  { %578 = vst [vmem:[%s816_s4 + $0x10] sm:$0xff] %v550_v60  }
 0x138   :  { %579 = vst [vmem:[%s816_s4 + $0x18] sm:$0xff] %v555_v63  }
 0x139   :  { %580 = vst [vmem:[%s816_s4 + $0x20] sm:$0xff] %v560_v0  }
 0x13a   :  { %581 = vst [vmem:[%s816_s4 + $0x28] sm:$0xff] %v565_v1  }
 0x13b   :  { %582 = vst [vmem:[%s816_s4 + $0x30] sm:$0xff] %v570_v2  }
 0x13c   :  { %583 = vst [vmem:[%s816_s4 + $0x38] sm:$0xff] %v575_v3  }

// kernel: encoder_forward.5
= control target key start
LH: loop header
LB: loop body
LE: loop exit
PB: predicated region body
PF: predicated region fallthrough
CT: control target
= control target key end

     0   :  { %s349_s1 = inlined_call_operand.vmem [shape: bf16[128,128], index: 1, kind: input, shape index: {}]   ;;  %s350_s0 = inlined_call_operand.vmem [shape: bf16[32,128], index: 0, kind: input, shape index: {}]   ;;  %s351_s2 = inlined_call_operand.vmem [shape: f32[1,128], index: 2, kind: input, shape index: {}]   ;;  %s352_s3 = inlined_call_operand.vmem [shape: f32[1,128], index: 3, kind: input, shape index: {}]   ;;  %s353_s4 = inlined_call_operand.vmem [shape: bf16[32,128], index: 4, kind: output, shape index: {}]  }
   0x1   :  { %v260_v0 = vld [vmem:[%s349_s1 + $0x38] sm:$0xff]  ;;  %v259_v1 = vld [vmem:[%s349_s1 + $0x30] sm:$0xff]  ;;  %v258_v2 = vld [vmem:[%s349_s1 + $0x28] sm:$0xff] }
   0x2   :  { %97 = vmatpush.bf16.msra.mxu0 %v260_v0  ;;  %272 = vmatpush.bf16.msra.mxu1 %v260_v0  ;;  %v257_v3 = vld [vmem:[%s349_s1 + $0x20] sm:$0xff]  ;;  %v256_v4 = vld [vmem:[%s349_s1 + $0x18] sm:$0xff]  ;;  %v255_v5 = vld [vmem:[%s349_s1 + $0x10] sm:$0xff] }
   0x3   :  { %v254_v6 = vld [vmem:[%s349_s1 + $0x8] sm:$0xff]  ;;  %v253_v7 = vld [vmem:[%s349_s1] sm:$0xff] }
   0x4   :  { %v251_v8 = vld [vmem:[%s350_s0] sm:$0xff]  ;;  %v252_v9 = vld [vmem:[%s350_s0 + $0x8] sm:$0xff] }
   0x5   :  { %v165_v48 = vld [vmem:[%s351_s2] sm:$0x1] }
   0x6   :  { %98 = vmatpush.bf16.msra.mxu0 %v259_v1  ;;  %273 = vmatpush.bf16.msra.mxu1 %v259_v1  ;;  %v178_v52 = vld [vmem:[%s352_s3] sm:$0x1] }
   0xa   :  { %99 = vmatpush.bf16.msra.mxu0 %v258_v2  ;;  %274 = vmatpush.bf16.msra.mxu1 %v258_v2 }
   0xe   :  { %100 = vmatpush.bf16.msra.mxu0 %v257_v3  ;;  %275 = vmatpush.bf16.msra.mxu1 %v257_v3 }
  0x12   :  { %101 = vmatpush.bf16.msra.mxu0 %v256_v4  ;;  %276 = vmatpush.bf16.msra.mxu1 %v256_v4 }
  0x16   :  { %102 = vmatpush.bf16.msra.mxu0 %v255_v5  ;;  %277 = vmatpush.bf16.msra.mxu1 %v255_v5 }
  0x1a   :  { %103 = vmatpush.bf16.msra.mxu0 %v254_v6  ;;  %278 = vmatpush.bf16.msra.mxu1 %v254_v6 }
  0x1e   :  { %104 = vmatpush.bf16.msra.mxu0 %v253_v7  ;;  %279 = vmatpush.bf16.msra.mxu1 %v253_v7 }
  0x21   :  { %105 = vmatmul.bf16.vlgmr.msra.gmra.mxu0 %v251_v8  ;;  %110 = vmatmul.bf16.vlgmr.msra.gmra.mxu1 %v252_v9 }
  0x9e   :  { %v106_v10 = vpop.f32.mrf.mxu0  ;;  %v111_v11 = vpop.f32.mrf.mxu1 }
  0xa6   :  { %v108_v12 = vpop.f32.mrf.mxu0  ;;  %v113_v15 = vpop.f32.mrf.mxu1 }
  0xa7   :  { %v116_v13 = vadd.f32 %v108_v12, %v106_v10 }
  0xa9   :  { %v117_v14 = vadd.f32 %v116_v13, %v111_v11 }
  0xab   :  { %v118_v16 = vadd.f32 %v117_v14, %v113_v15 }
  0xad   :  { %v119_v17 = vrot.slane %v118_v16, 4 }
  0xaf   :  { %v120_v18 = vadd.f32 %v119_v17, %v118_v16 }
  0xb1   :  { %v121_v19 = vrot.slane %v120_v18, 2 }
  0xb3   :  { %v122_v20 = vadd.f32 %v121_v19, %v120_v18 }
  0xb5   :  { %v123_v21 = vrot.slane %v122_v20, 1 }
  0xb7   :  { %v124_v22 = vadd.f32 %v123_v21, %v122_v20 }
  0xb9   :  { %v125_v23 = vmul.f32 0.03125, %v124_v22 }
  0xbb   :  { %v135_v24 = vsub.f32 %v106_v10, %v125_v23  ;;  %v136_v25 = vsub.f32 %v108_v12, %v125_v23  ;;  %v137_v26 = vsub.f32 %v111_v11, %v125_v23  ;;  %v138_v27 = vsub.f32 %v113_v15, %v125_v23 }
  0xbd   :  { %v151_v28 = vmul.f32 %v135_v24, %v135_v24  ;;  %v152_v29 = vmul.f32 %v136_v25, %v136_v25  ;;  %v153_v30 = vmul.f32 %v137_v26, %v137_v26  ;;  %v154_v32 = vmul.f32 %v138_v27, %v138_v27 }
  0xbf   :  { %v155_v31 = vadd.f32 %v152_v29, %v151_v28 }
  0xc1   :  { %v156_v33 = vadd.f32 %v155_v31, %v153_v30 }
  0xc3   :  { %v157_v34 = vadd.f32 %v156_v33, %v154_v32 }
  0xc5   :  { %v158_v35 = vrot.slane %v157_v34, 4 }
  0xc7   :  { %v159_v36 = vadd.f32 %v158_v35, %v157_v34 }
  0xc9   :  { %v160_v37 = vrot.slane %v159_v36, 2 }
  0xcb   :  { %v161_v38 = vadd.f32 %v160_v37, %v159_v36 }
  0xcd   :  { %v162_v39 = vrot.slane %v161_v38, 1 }
  0xcf   :  { %v163_v40 = vadd.f32 %v162_v39, %v161_v38 }
  0xd1   :  { %v164_v41 = vmul.f32 0.03125, %v163_v40 }
  0xd3   :  { %v166_v42 = vadd.f32 1e-05, %v164_v41 }
  0xd5   :  { %280 = vrsqrt.f32 %v166_v42  ;;  %vm173_vm1 = vweird.f32 %v166_v42 }
  0xdb   :  { %v281_v43 = vpop.eup %280 }
  0xdc   :  { %v168_v44 = vmul.f32 %v281_v43, %v166_v42  ;;  %vm174_vm0 = vweird.f32 %v281_v43 }
  0xdd   :  { %vm175_vm2 = vmor %vm173_vm1, %vm174_vm0 }
  0xde   :  { %v169_v45 = vmul.f32 %v281_v43, %v168_v44 }
  0xe0   :  { %v170_v46 = vmul.f32 0.5, %v169_v45 }
  0xe2   :  { %v171_v47 = vsub.f32 1.5, %v170_v46 }
  0xe4   :  { %v172_v49 = vmul.f32 %v281_v43, %v171_v47 }
  0xe6   :  { %v176_v50 = vsel %vm175_vm2, %v281_v43, %v172_v49 }
  0xe7   :  { %v177_v51 = vmul.f32 %v176_v50, %v165_v48 }
  0xe9   :  { %v179_v53 = vmul.f32 %v177_v51, %v125_v23  ;;  %v182_v54 = vperm.slane %v177_v51, 0 }
  0xeb   :  { %v180_v55 = vsub.f32 %v178_v52, %v179_v53  ;;  %v184_v56 = vmul.f32 %v182_v54, %v106_v10  ;;  %v185_v57 = vmul.f32 %v182_v54, %v108_v12  ;;  %v186_v58 = vmul.f32 %v182_v54, %v111_v11 }
  0xec   :  { %v187_v59 = vmul.f32 %v182_v54, %v113_v15 }
  0xed   :  { %v189_v60 = vperm.slane %v180_v55, 0 }
  0xef   :  { %v191_v61 = vadd.f32 %v189_v60, %v184_v56  ;;  %v192_v62 = vadd.f32 %v189_v60, %v185_v57  ;;  %v193_v63 = vadd.f32 %v189_v60, %v186_v58  ;;  %v194_v0 = vadd.f32 %v189_v60, %v187_v59 }
  0xf1   :  { %v195_v1 = vmax.f32 %v191_v61, 0.0  ;;  %v196_v2 = vmax.f32 %v192_v62, 0.0  ;;  %v197_v3 = vmax.f32 %v193_v63, 0.0  ;;  %v198_v4 = vmax.f32 %v194_v0, 0.0 }
  0xf3   :  { %v264_v5 = vpack.c.bf16 %v196_v2, %v195_v1  ;;  %v269_v6 = vpack.c.bf16 %v198_v4, %v197_v3 }
  0xf5   :  { %265 = vst [vmem:[%s353_s4] sm:$0xff] %v264_v5  }
  0xf6   :  { %271 = vst [vmem:[%s353_s4 + $0x8] sm:$0xff] %v269_v6  }

// kernel: encoder_forward.7
= control target key start
LH: loop header
LB: loop body
LE: loop exit
PB: predicated region body
PF: predicated region fallthrough
CT: control target
= control target key end

     0   :  { %s250_s1 = inlined_call_operand.vmem [shape: bf16[128,128], index: 1, kind: input, shape index: {}]   ;;  %s251_s0 = inlined_call_operand.vmem [shape: bf16[8,128], index: 0, kind: input, shape index: {}]   ;;  %s252_s2 = inlined_call_operand.vmem [shape: f32[1,128], index: 2, kind: input, shape index: {}]   ;;  %s253_s3 = inlined_call_operand.vmem [shape: f32[1,128], index: 3, kind: input, shape index: {}]   ;;  %s254_s4 = inlined_call_operand.vmem [shape: f32[8,128], index: 4, kind: output, shape index: {}]  }
   0x1   :  { %v186_v0 = vld [vmem:[%s250_s1 + $0x38] sm:$0xff]  ;;  %v185_v1 = vld [vmem:[%s250_s1 + $0x30] sm:$0xff]  ;;  %v184_v2 = vld [vmem:[%s250_s1 + $0x28] sm:$0xff] }
   0x2   :  { %82 = vmatpush.bf16.msra.mxu0 %v186_v0  ;;  %v183_v3 = vld [vmem:[%s250_s1 + $0x20] sm:$0xff]  ;;  %v182_v4 = vld [vmem:[%s250_s1 + $0x18] sm:$0xff]  ;;  %v181_v5 = vld [vmem:[%s250_s1 + $0x10] sm:$0xff] }
   0x3   :  { %v180_v6 = vld [vmem:[%s250_s1 + $0x8] sm:$0xff]  ;;  %v179_v7 = vld [vmem:[%s250_s1] sm:$0xff] }
   0x4   :  { %v17_v8 = vld [vmem:[%s251_s0] sm:$0xf] }
   0x5   :  { %v117_v33 = vld [vmem:[%s252_s2] sm:$0x1] }
   0x6   :  { %83 = vmatpush.bf16.msra.mxu0 %v185_v1  ;;  %v130_v37 = vld [vmem:[%s253_s3] sm:$0x1] }
   0xa   :  { %84 = vmatpush.bf16.msra.mxu0 %v184_v2 }
   0xe   :  { %85 = vmatpush.bf16.msra.mxu0 %v183_v3 }
  0x12   :  { %86 = vmatpush.bf16.msra.mxu0 %v182_v4 }
  0x16   :  { %87 = vmatpush.bf16.msra.mxu0 %v181_v5 }
  0x1a   :  { %88 = vmatpush.bf16.msra.mxu0 %v180_v6 }
  0x1e   :  { %89 = vmatpush.bf16.msra.mxu0 %v179_v7 }
  0x21   :  { %90 = vmatmul.bf16.vlgmr.msra.gmra.mxu0 %v17_v8 }
  0x9e   :  { %v91_v9 = vpop.f32.mrf.mxu0 }
  0x9f   :  { %v95_v10 = vrot.slane %v91_v9, 4 }
  0xa1   :  { %v96_v11 = vadd.f32 %v95_v10, %v91_v9 }
  0xa3   :  { %v97_v12 = vrot.slane %v96_v11, 2 }
  0xa5   :  { %v98_v13 = vadd.f32 %v97_v12, %v96_v11 }
  0xa6   :  { %v93_v14 = vpop.f32.mrf.mxu0 }
  0xa7   :  { %v99_v15 = vrot.slane %v98_v13, 1 }
  0xa9   :  { %v100_v16 = vadd.f32 %v99_v15, %v98_v13 }
  0xab   :  { %v101_v17 = vmul.f32 0.125, %v100_v16 }
  0xad   :  { %v105_v18 = vsub.f32 %v91_v9, %v101_v17 }
  0xaf   :  { %v109_v19 = vmul.f32 %v105_v18, %v105_v18 }
  0xb1   :  { %v110_v20 = vrot.slane %v109_v19, 4 }
  0xb3   :  { %v111_v21 = vadd.f32 %v110_v20, %v109_v19 }
  0xb5   :  { %v112_v22 = vrot.slane %v111_v21, 2 }
  0xb7   :  { %v113_v23 = vadd.f32 %v112_v22, %v111_v21 }
  0xb9   :  { %v114_v24 = vrot.slane %v113_v23, 1 }
  0xbb   :  { %v115_v25 = vadd.f32 %v114_v24, %v113_v23 }
  0xbd   :  { %v116_v26 = vmul.f32 0.125, %v115_v25 }
  0xbf   :  { %v118_v27 = vadd.f32 1e-05, %v116_v26 }
  0xc1   :  { %187 = vrsqrt.f32 %v118_v27  ;;  %vm125_vm1 = vweird.f32 %v118_v27 }
  0xc7   :  { %v188_v28 = vpop.eup %187 }
  0xc8   :  { %v120_v29 = vmul.f32 %v188_v28, %v118_v27  ;;  %vm126_vm0 = vweird.f32 %v188_v28 }
  0xc9   :  { %vm127_vm2 = vmor %vm125_vm1, %vm126_vm0 }
  0xca   :  { %v121_v30 = vmul.f32 %v188_v28, %v120_v29 }
  0xcc   :  { %v122_v31 = vmul.f32 0.5, %v121_v30 }
  0xce   :  { %v123_v32 = vsub.f32 1.5, %v122_v31 }
  0xd0   :  { %v124_v34 = vmul.f32 %v188_v28, %v123_v32 }
  0xd2   :  { %v128_v35 = vsel %vm127_vm2, %v188_v28, %v124_v34 }
  0xd3   :  { %v129_v36 = vmul.f32 %v128_v35, %v117_v33 }
  0xd5   :  { %v131_v38 = vmul.f32 %v129_v36, %v101_v17  ;;  %v134_v39 = vperm.slane %v129_v36, 0 }
  0xd7   :  { %v132_v40 = vsub.f32 %v130_v37, %v131_v38  ;;  %v136_v41 = vmul.f32 %v134_v39, %v91_v9 }
  0xd9   :  { %v138_v42 = vperm.slane %v132_v40, 0 }
  0xdb   :  { %v140_v43 = vadd.f32 %v138_v42, %v136_v41 }
  0xdd   :  { %v141_v44 = vmax.f32 %v140_v43, 0.0 }
  0xdf   :  { %142 = vst [vmem:[%s254_s4] sm:$0xff] %v141_v44 }

// kernel: encoder_forward.6
= control target key start
LH: loop header
LB: loop body
LE: loop exit
PB: predicated region body
PF: predicated region fallthrough
CT: control target
= control target key end

     0   :  { %s399_s1 = inlined_call_operand.vmem [shape: bf16[256,128], index: 1, kind: input, shape index: {}]   ;;  %s400_s0 = inlined_call_operand.vmem [shape: bf16[8,256], index: 0, kind: input, shape index: {}]   ;;  %s401_s2 = inlined_call_operand.vmem [shape: f32[1,128], index: 2, kind: input, shape index: {}]   ;;  %s402_s3 = inlined_call_operand.vmem [shape: f32[1,128], index: 3, kind: input, shape index: {}]   ;;  %s403_s4 = inlined_call_operand.vmem [shape: bf16[8,128], index: 4, kind: output, shape index: {}]  }
   0x1   :  { %v303_v0 = vld [vmem:[%s399_s1 + $0x38] sm:$0xff]  ;;  %v302_v2 = vld [vmem:[%s399_s1 + $0x30] sm:$0xff]  ;;  %v301_v4 = vld [vmem:[%s399_s1 + $0x28] sm:$0xff] }
   0x2   :  { %v311_v1 = vld [vmem:[%s399_s1 + $0x78] sm:$0xff]  ;;  %153 = vmatpush.bf16.msra.mxu0 %v303_v0  ;;  %v310_v3 = vld [vmem:[%s399_s1 + $0x70] sm:$0xff]  ;;  %v309_v5 = vld [vmem:[%s399_s1 + $0x68] sm:$0xff] }
   0x3   :  { %166 = vmatpush.bf16.msra.mxu1 %v311_v1  ;;  %v300_v6 = vld [vmem:[%s399_s1 + $0x20] sm:$0xff]  ;;  %v299_v8 = vld [vmem:[%s399_s1 + $0x18] sm:$0xff]  ;;  %v298_v10 = vld [vmem:[%s399_s1 + $0x10] sm:$0xff] }
   0x4   :  { %v308_v7 = vld [vmem:[%s399_s1 + $0x60] sm:$0xff]  ;;  %v307_v9 = vld [vmem:[%s399_s1 + $0x58] sm:$0xff]  ;;  %v306_v11 = vld [vmem:[%s399_s1 + $0x50] sm:$0xff] }
   0x5   :  { %v297_v12 = vld [vmem:[%s399_s1 + $0x8] sm:$0xff]  ;;  %v17_v14 = vld [vmem:[%s400_s0] sm:$0xff] }
   0x6   :  { %154 = vmatpush.bf16.msra.mxu0 %v302_v2  ;;  %v305_v13 = vld [vmem:[%s399_s1 + $0x48] sm:$0xff]  ;;  %v51_v15 = vunpack.c.l.b16 %v17_v14  ;;  %v52_v16 = vunpack.c.h.b16 %v17_v14  ;;  %v296_v17 = vld [vmem:[%s399_s1] sm:$0xff] }
   0x7   :  { %167 = vmatpush.bf16.msra.mxu1 %v310_v3  ;;  %v304_v18 = vld [vmem:[%s399_s1 + $0x40] sm:$0xff] }
   0x8   :  { %v53_v19 = vpack.c.b16 %v51_v15, %v51_v15  ;;  %v54_v20 = vpack.c.b16 %v52_v16, %v52_v16  ;;  %v201_v48 = vld [vmem:[%s401_s2] sm:$0x1] }
   0x9   :  { %v214_v52 = vld [vmem:[%s402_s3] sm:$0x1] }
   0xa   :  { %155 = vmatpush.bf16.msra.mxu0 %v301_v4 }
   0xb   :  { %168 = vmatpush.bf16.msra.mxu1 %v309_v5 }
   0xe   :  { %156 = vmatpush.bf16.msra.mxu0 %v300_v6 }
   0xf   :  { %169 = vmatpush.bf16.msra.mxu1 %v308_v7 }
  0x12   :  { %157 = vmatpush.bf16.msra.mxu0 %v299_v8 }
  0x13   :  { %170 = vmatpush.bf16.msra.mxu1 %v307_v9 }
  0x16   :  { %158 = vmatpush.bf16.msra.mxu0 %v298_v10 }
  0x17   :  { %171 = vmatpush.bf16.msra.mxu1 %v306_v11 }
  0x1a   :  { %159 = vmatpush.bf16.msra.mxu0 %v297_v12 }
  0x1b   :  { %172 = vmatpush.bf16.msra.mxu1 %v305_v13 }
  0x1e   :  { %160 = vmatpush.bf16.msra.mxu0 %v296_v17 }
  0x1f   :  { %173 = vmatpush.bf16.msra.mxu1 %v304_v18 }
  0x21   :  { %161 = vmatmul.bf16.vlgmr.msra.gmra.mxu0 %v53_v19 }
  0x22   :  { %174 = vmatmul.bf16.vlgmr.msra.gmra.mxu1 %v54_v20 }
  0x9e   :  { %v162_v21 = vpop.f32.mrf.mxu0 }
  0x9f   :  { %v175_v22 = vpop.f32.mrf.mxu1 }
  0xa0   :  { %v176_v23 = vadd.f32 %v175_v22, %v162_v21 }
  0xa2   :  { %v179_v24 = vrot.slane %v176_v23, 4 }
  0xa4   :  { %v180_v25 = vadd.f32 %v179_v24, %v176_v23 }
  0xa6   :  { %v181_v26 = vrot.slane %v180_v25, 2  ;;  %v164_v27 = vpop.f32.mrf.mxu0 }
  0xa7   :  { %v177_v28 = vpop.f32.mrf.mxu1 }
  0xa8   :  { %v182_v29 = vadd.f32 %v181_v26, %v180_v25 }
  0xaa   :  { %v183_v30 = vrot.slane %v182_v29, 1 }
  0xac   :  { %v184_v31 = vadd.f32 %v183_v30, %v182_v29 }
  0xae   :  { %v185_v32 = vmul.f32 0.125, %v184_v31 }
  0xb0   :  { %v189_v33 = vsub.f32 %v176_v23, %v185_v32 }
  0xb2   :  { %v193_v34 = vmul.f32 %v189_v33, %v189_v33 }
  0xb4   :  { %v194_v35 = vrot.slane %v193_v34, 4 }
  0xb6   :  { %v195_v36 = vadd.f32 %v194_v35, %v193_v34 }
  0xb8   :  { %v196_v37 = vrot.slane %v195_v36, 2 }
  0xba   :  { %v197_v38 = vadd.f32 %v196_v37, %v195_v36 }
  0xbc   :  { %v198_v39 = vrot.slane %v197_v38, 1 }
  0xbe   :  { %v199_v40 = vadd.f32 %v198_v39, %v197_v38 }
  0xc0   :  { %v200_v41 = vmul.f32 0.125, %v199_v40 }
  0xc2   :  { %v202_v42 = vadd.f32 1e-05, %v200_v41 }
  0xc4   :  { %312 = vrsqrt.f32 %v202_v42  ;;  %vm209_vm1 = vweird.f32 %v202_v42 }
  0xca   :  { %v313_v43 = vpop.eup %312 }
  0xcb   :  { %v204_v44 = vmul.f32 %v313_v43, %v202_v42  ;;  %vm210_vm0 = vweird.f32 %v313_v43 }
  0xcc   :  { %vm211_vm2 = vmor %vm209_vm1, %vm210_vm0 }
  0xcd   :  { %v205_v45 = vmul.f32 %v313_v43, %v204_v44 }
  0xcf   :  { %v206_v46 = vmul.f32 0.5, %v205_v45 }
  0xd1   :  { %v207_v47 = vsub.f32 1.5, %v206_v46 }
  0xd3   :  { %v208_v49 = vmul.f32 %v313_v43, %v207_v47 }
  0xd5   :  { %v212_v50 = vsel %vm211_vm2, %v313_v43, %v208_v49 }
  0xd6   :  { %v213_v51 = vmul.f32 %v212_v50, %v201_v48 }
  0xd8   :  { %v215_v53 = vmul.f32 %v213_v51, %v185_v32  ;;  %v218_v54 = vperm.slane %v213_v51, 0 }
  0xda   :  { %v216_v55 = vsub.f32 %v214_v52, %v215_v53  ;;  %v220_v56 = vmul.f32 %v218_v54, %v176_v23 }
  0xdc   :  { %v222_v57 = vperm.slane %v216_v55, 0 }
  0xde   :  { %v224_v58 = vadd.f32 %v222_v57, %v220_v56 }
  0xe0   :  { %v225_v59 = vmax.f32 %v224_v58, 0.0 }
  0xe2   :  { %v226_v60 = vpack.c.bf16 %v225_v59, %v225_v59 }
  0xe4   :  { %227 = vst [vmem:[%s403_s4] sm:$0xf] %v226_v60 }

</bundles_post_ra>
